<compile_context>
chip_gen: v7x
topology: tpu7x:2x2x1
jax: 0.10.0
libtpu: 0.0.40
codegen_flags: <defaults>
</compile_context>

<pallas_src>
import functools
import math

import jax
import jax.numpy as jnp
from jax import lax
from jax.experimental import pallas as pl
from jax.experimental.pallas import tpu as pltpu


# --------------------------------------------------------------------------
# Small helpers
# --------------------------------------------------------------------------
def _round_up(x, m):
    return (x + m - 1) // m * m


def _vmem_limit(tile_bytes):
    """Tile-derived VMEM budget with ~25% headroom, kept inside v7x's 64 MiB."""
    need = int(tile_bytes * 1.25) + (2 << 20)
    return int(min(max(need, 8 << 20), 48 << 20))


# --------------------------------------------------------------------------
# Pallas kernel 1: per-batch style modulation + demodulation of the weight.
# Hoisted out of the spatial loop so the rsqrt reduction runs once per batch.
# --------------------------------------------------------------------------
def _modulate_kernel(s_ref, w_ref, o_ref, *, demodulate, eps):
    # s_ref: (1, CKp)      per-batch style, repeated k*k times per in-channel
    # w_ref: (Coutp, CKp)  equalized (c-scaled) conv weight, zero padded
    # o_ref: (Coutp, CKp)  modulated (+demodulated) weight for this batch
    w = w_ref[...].astype(jnp.float32)
    s = s_ref[...].astype(jnp.float32)
    wm = w * s
    if demodulate:
        sig_inv = lax.rsqrt(jnp.sum(wm * wm, axis=1, keepdims=True) + eps)
        wm = wm * sig_inv
    o_ref[...] = wm.astype(o_ref.dtype)


def _modulate_weights(s_rep, w_flat, *, demodulate, eps, out_dtype):
    B = s_rep.shape[0]
    Coutp, CKp = w_flat.shape
    vmem = _vmem_limit(2 * CKp * 4
                       + 2 * Coutp * CKp * 4
                       + 2 * Coutp * CKp * jnp.dtype(out_dtype).itemsize)
    kern = functools.partial(_modulate_kernel, demodulate=demodulate, eps=eps)
    return pl.pallas_call(
        kern,
        out_shape=jax.ShapeDtypeStruct((B, Coutp, CKp), out_dtype),
        grid=(B,),
        in_specs=[pl.BlockSpec((None, 1, CKp), lambda b: (b, 0, 0)),
                  pl.BlockSpec((Coutp, CKp), lambda b: (0, 0))],
        out_specs=pl.BlockSpec((None, Coutp, CKp), lambda b: (b, 0, 0)),
        compiler_params=pltpu.CompilerParams(
            dimension_semantics=("parallel",),
            vmem_limit_bytes=vmem),
    )(s_rep, w_flat)


# --------------------------------------------------------------------------
# Pallas kernel 2: tiled modulated-conv matmul with f32 accumulator.
# --------------------------------------------------------------------------
def _mod_conv_kernel(x_ref, w_ref, o_ref, acc_ref):
    # x_ref  : (tn, tk)     im2col'd input tile (compute dtype, e.g. bf16)
    # w_ref  : (Coutp, tk)  per-batch modulated weight tile (compute dtype)
    # o_ref  : (tn, Coutp)  output tile (written on the last CK step)
    # acc_ref: (tn, Coutp)  f32 accumulator scratch (persists across the CK axis)
    kk = pl.program_id(2)

    @pl.when(kk == 0)
    def _init():
        acc_ref[...] = jnp.zeros_like(acc_ref)

    acc_ref[...] += lax.dot_general(
        x_ref[...], w_ref[...],
        dimension_numbers=(((1,), (1,)), ((), ())),
        preferred_element_type=jnp.float32)

    @pl.when(kk == pl.num_programs(2) - 1)
    def _finalize():
        o_ref[...] = acc_ref[...].astype(o_ref.dtype)


def _modulated_matmul(cols, wm, *, tn, tk, out_dtype):
    B, Np, CKp = cols.shape
    Coutp = wm.shape[1]
    grid = (B, Np // tn, CKp // tk)

    itemsize = jnp.dtype(cols.dtype).itemsize
    vmem = _vmem_limit(2 * tn * tk * itemsize        # cols tile (double-buffered)
                       + 2 * Coutp * tk * itemsize   # weight tile
                       + 2 * tn * Coutp * 4          # output tile
                       + tn * Coutp * 4)             # f32 accumulator scratch

    return pl.pallas_call(
        _mod_conv_kernel,
        out_shape=jax.ShapeDtypeStruct((B, Np, Coutp), out_dtype),
        grid_spec=pltpu.PrefetchScalarGridSpec(
            num_scalar_prefetch=0,
            grid=grid,
            in_specs=[
                pl.BlockSpec((None, tn, tk), lambda b, n, k: (b, n, k)),
                pl.BlockSpec((None, Coutp, tk), lambda b, n, k: (b, 0, k)),
            ],
            out_specs=pl.BlockSpec((None, tn, Coutp), lambda b, n, k: (b, n, 0)),
            scratch_shapes=[pltpu.VMEM((tn, Coutp), jnp.float32)]),
        compiler_params=pltpu.CompilerParams(
            dimension_semantics=("parallel", "parallel", "arbitrary"),
            vmem_limit_bytes=vmem),
    )(cols, wm)


# --------------------------------------------------------------------------
# Plain-JAX glue: tiny style MLP, im2col, layout conversions.
# --------------------------------------------------------------------------
def _equalized_linear(x, w, b):
    c = 1.0 / math.sqrt(w.shape[1])
    return jnp.matmul(x, (w * c).T, precision=lax.Precision.HIGHEST) + b


def _prelu(x, a):
    return jnp.maximum(x, 0.0) + a * jnp.minimum(x, 0.0)


def _to_style(z, params):
    # to_style = MappingNetwork(d_latent, 2) -> EqualizedLinear(d_latent, in_planes)
    st = params["style"]
    h = _prelu(_equalized_linear(z, st["m1_w"], st["m1_b"]), st["m1_a"])
    h = _prelu(_equalized_linear(h, st["m2_w"], st["m2_b"]), st["m2_a"])
    return _equalized_linear(h, st["lin_w"], st["lin_b"])


def _im2col_replicate(x_nchw, k):
    B, C, H, W = x_nchw.shape
    if k == 1:
        # fast path: no padding / patch extraction needed for 1x1 convs
        return jnp.transpose(x_nchw.reshape(B, C, H * W), (0, 2, 1))
    pad = (k - 1) // 2
    xp = jnp.pad(x_nchw, ((0, 0), (0, 0), (pad, pad), (pad, pad)), mode="edge")
    patches = [xp[:, :, kh:kh + H, kw:kw + W] for kh in range(k) for kw in range(k)]
    cols = jnp.stack(patches, axis=2)                    # (B, C, K*K, H, W)
    cols = cols.reshape(B, C * k * k, H * W)
    return jnp.transpose(cols, (0, 2, 1))                # (B, N, C*K*K)


# --------------------------------------------------------------------------
# Conv2dWeightModulate forward pass.
# --------------------------------------------------------------------------
@functools.partial(jax.jit, static_argnames=("kernel_size", "demodulate", "eps",
                                             "tn", "compute_dtype"))
def conv2d_weight_modulate(x, z, params, kernel_size, demodulate=True,
                           eps=1e-8, tn=256, compute_dtype=jnp.bfloat16):
    """x: (B, Cin, H, W) NCHW, z: (B, d_latent).  Returns (B, Cout, H, W)."""
    B, Cin, H, W = x.shape
    k = kernel_size
    Cout = params["conv_w"].shape[0]
    N, CK = H * W, Cin * k * k

    # ---- style path (tiny per-latent MLP) kept as plain-JAX glue ----------
    s = _to_style(z, params)                               # (B, Cin)
    s_rep = jnp.repeat(s, k * k, axis=1)                   # (B, Cin*k*k)

    # ---- lane-dense padding: Cout and CK up to multiples of 128 -----------
    CKp = _round_up(CK, 128)
    Coutp = _round_up(Cout, 128)
    c = 1.0 / math.sqrt(CK)                                # EqualizedWeight scale
    w_flat = (params["conv_w"].astype(jnp.float32) * c).reshape(Cout, CK)
    w_flat = jnp.pad(w_flat, ((0, Coutp - Cout), (0, CKp - CK)))
    s_rep = jnp.pad(s_rep, ((0, 0), (0, CKp - CK))).reshape(B, 1, CKp)

    # ---- per-batch modulation + demodulation (once per batch, not per tile)
    wm = _modulate_weights(s_rep, w_flat, demodulate=demodulate, eps=eps,
                           out_dtype=compute_dtype)        # (B, Coutp, CKp)

    # ---- im2col (k==1 skips it) + bf16 cast + spatial padding -------------
    cols = _im2col_replicate(x, k)                         # (B, N, CK)
    tn_eff = _round_up(min(tn, max(N, 1)), 128)
    Np = _round_up(N, tn_eff)
    cols = jnp.pad(cols, ((0, 0), (0, Np - N), (0, CKp - CK)))
    cols = cols.astype(compute_dtype)
    tk = max(d for d in (512, 256, 128) if CKp % d == 0)

    out = _modulated_matmul(cols, wm, tn=tn_eff, tk=tk, out_dtype=x.dtype)
    out = out[:, :N, :Cout]                                # strip padding
    return jnp.transpose(out, (0, 2, 1)).reshape(B, Cout, H, W)


# --------------------------------------------------------------------------
# Pure-JAX f32 reference that mirrors the PyTorch module (for validation).
# --------------------------------------------------------------------------
def conv2d_weight_modulate_reference(x, z, params, kernel_size,
                                     demodulate=True, eps=1e-8):
    B, Cin, H, W = x.shape
    k = kernel_size
    s = _to_style(z, params)                                       # (B, Cin)
    c = 1.0 / math.sqrt(Cin * k * k)
    w = (params["conv_w"] * c)[None] * s[:, None, :, None, None]   # (B,Co,Ci,k,k)
    if demodulate:
        sig_inv = lax.rsqrt(jnp.sum(w * w, axis=(2, 3, 4), keepdims=True) + eps)
        w = w * sig_inv
    pad = (k - 1) // 2
    xp = jnp.pad(x, ((0, 0), (0, 0), (pad, pad), (pad, pad)), mode="edge")

    def one(xi, wi):
        return lax.conv_general_dilated(
            xi[None], wi, window_strides=(1, 1), padding="VALID",
            dimension_numbers=("NCHW", "OIHW", "NCHW"),
            precision=lax.Precision.HIGHEST)[0]

    return jax.vmap(one)(xp, w)                            # (B, Cout, H, W)


# --------------------------------------------------------------------------
# Deterministic parameter init (shapes match the PyTorch module).
# --------------------------------------------------------------------------
def init_conv2d_weight_modulate(key, d_latent, in_planes, out_planes, kernel_size):
    ks = jax.random.split(key, 7)
    return {
        "style": {
            "m1_w": jax.random.normal(ks[0], (d_latent, d_latent), jnp.float32),
            "m1_b": jax.random.normal(ks[1], (d_latent,), jnp.float32),
            "m1_a": jnp.full((d_latent,), 0.25, jnp.float32),   # PReLU default init
            "m2_w": jax.random.normal(ks[2], (d_latent, d_latent), jnp.float32),
            "m2_b": jax.random.normal(ks[3], (d_latent,), jnp.float32),
            "m2_a": jnp.full((d_latent,), 0.25, jnp.float32),
            "lin_w": jax.random.normal(ks[4], (in_planes, d_latent), jnp.float32),
            "lin_b": jax.random.normal(ks[5], (in_planes,), jnp.float32),
        },
        "conv_w": jax.random.normal(
            ks[6], (out_planes, in_planes, kernel_size, kernel_size), jnp.float32),
    }


# --------------------------------------------------------------------------
if __name__ == "__main__":
    key = jax.random.PRNGKey(0)
    B, d_latent, in_planes, out_planes, ksize = 2, 16, 4, 8, 3
    H = W = 16

    kp, kx, kz = jax.random.split(key, 3)
    params = init_conv2d_weight_modulate(kp, d_latent, in_planes, out_planes, ksize)
    x = jax.random.normal(kx, (B, in_planes, H, W), jnp.float32)
    z = jax.random.normal(kz, (B, d_latent), jnp.float32)

    out = conv2d_weight_modulate(x, z, params, ksize, tn=128)
    out = jax.block_until_ready(out)

    assert out.shape == (B, out_planes, H, W), out.shape
    assert bool(jnp.all(jnp.isfinite(out)))

    ref = conv2d_weight_modulate_reference(x, z, params, ksize)
    max_err = float(jnp.max(jnp.abs(out - ref)))
    # bf16 MXU operands with f32 accumulation -> loose-ish tolerance vs f32 ref
    assert bool(jnp.allclose(out, ref, rtol=5e-2, atol=5e-2)), max_err

    print("KERNEL_OK")
</pallas_src>

<mosaic_0001>
module attributes {stable_mosaic.version = 11 : i64} {
  func.func @_modulate_kernel(%arg0: i32, %arg1: memref<1x1x128xf32, #tpu.memory_space<vmem>>, %arg2: memref<128x128xf32, #tpu.memory_space<vmem>>, %arg3: memref<1x128x128xbf16, #tpu.memory_space<vmem>>) attributes {dimension_semantics = [#tpu.dimension_semantics<parallel>], iteration_bounds = array<i64: 2>, scalar_prefetch = 0 : i64, scratch_operands = 0 : i64, tpu.core_type = #tpu.core_type<tc>, window_params = [{transform_indices = @transform_0, window_bounds = array<i64: 1, 1, 128>}, {pipeline_mode = #tpu.pipeline_mode<synchronous>, transform_indices = @transform_1, window_bounds = array<i64: 128, 128>}, {transform_indices = @transform_2, window_bounds = array<i64: 1, 128, 128>}]} {
    %c0 = arith.constant 0 : index
    %c0_0 = arith.constant 0 : index
    %0 = vector.load %arg2[%c0, %c0_0] : memref<128x128xf32, #tpu.memory_space<vmem>>, vector<128x128xf32>
    %c0_1 = arith.constant 0 : index
    %c0_2 = arith.constant 0 : index
    %c0_3 = arith.constant 0 : index
    %1 = vector.load %arg1[%c0_1, %c0_2, %c0_3] : memref<1x1x128xf32, #tpu.memory_space<vmem>>, vector<1x1x128xf32>
    %2 = vector.shape_cast %1 : vector<1x1x128xf32> to vector<1x128xf32>
    %3 = vector.broadcast %2 : vector<1x128xf32> to vector<128x128xf32>
    %4 = arith.mulf %0, %3 : vector<128x128xf32>
    %5 = arith.mulf %4, %4 : vector<128x128xf32>
    %cst = arith.constant dense<0.000000e+00> : vector<128xf32>
    %6 = vector.multi_reduction <add>, %5, %cst [1] : vector<128x128xf32> to vector<128xf32>
    %7 = vector.shape_cast %6 : vector<128xf32> to vector<128x1xf32>
    %cst_4 = arith.constant 9.99999993E-9 : f32
    %8 = vector.broadcast %cst_4 : f32 to vector<128x1xf32>
    %9 = arith.addf %7, %8 : vector<128x1xf32>
    %10 = math.rsqrt %9 : vector<128x1xf32>
    %11 = vector.broadcast %10 : vector<128x1xf32> to vector<128x128xf32>
    %12 = arith.mulf %4, %11 : vector<128x128xf32>
    %13 = arith.truncf %12 : vector<128x128xf32> to vector<128x128xbf16>
    %c0_5 = arith.constant 0 : index
    %c0_6 = arith.constant 0 : index
    %c0_7 = arith.constant 0 : index
    %14 = vector.load %arg3[%c0_5, %c0_6, %c0_7] : memref<1x128x128xbf16, #tpu.memory_space<vmem>>, vector<1x128x128xbf16>
    %15 = vector.shape_cast %14 : vector<1x128x128xbf16> to vector<128x128xbf16>
    %16 = vector.shape_cast %13 : vector<128x128xbf16> to vector<1x128x128xbf16>
    tpu.vector_store %arg3[%c0_5, %c0_6, %c0_7], %16 {strides = array<i32>} : memref<1x128x128xbf16, #tpu.memory_space<vmem>>, vector<1x128x128xbf16>,
    return
  }
  func.func @transform_0(%arg0: i32) -> (i32, i32, i32) {
    %c0_i32 = arith.constant 0 : i32
    %c0_i32_0 = arith.constant 0 : i32
    %c0_i32_1 = arith.constant 0 : i32
    return %arg0, %c0_i32, %c0_i32_0 : i32, i32, i32
  }
  func.func @transform_1(%arg0: i32) -> (i32, i32) {
    %c0_i32 = arith.constant 0 : i32
    %c0_i32_0 = arith.constant 0 : i32
    %c0_i32_1 = arith.constant 0 : i32
    return %c0_i32, %c0_i32_0 : i32, i32
  }
  func.func @transform_2(%arg0: i32) -> (i32, i32, i32) {
    %c0_i32 = arith.constant 0 : i32
    %c0_i32_0 = arith.constant 0 : i32
    %c0_i32_1 = arith.constant 0 : i32
    return %arg0, %c0_i32, %c0_i32_0 : i32, i32, i32
  }
}

module attributes {stable_mosaic.version = 11 : i64} {
  func.func @_mod_conv_kernel(%arg0: i32, %arg1: i32, %arg2: i32, %arg3: memref<1x128x128xbf16, #tpu.memory_space<vmem>>, %arg4: memref<1x128x128xbf16, #tpu.memory_space<vmem>>, %arg5: memref<1x128x128xf32, #tpu.memory_space<vmem>>, %arg6: memref<128x128xf32, #tpu.memory_space<vmem>>) attributes {dimension_semantics = [#tpu.dimension_semantics<parallel>, #tpu.dimension_semantics<parallel>, #tpu.dimension_semantics<arbitrary>], iteration_bounds = array<i64: 2, 2, 1>, scalar_prefetch = 0 : i64, scratch_operands = 1 : i64, tpu.core_type = #tpu.core_type<tc>, window_params = [{transform_indices = @transform_0, window_bounds = array<i64: 1, 128, 128>}, {transform_indices = @transform_1, window_bounds = array<i64: 1, 128, 128>}, {transform_indices = @transform_2, window_bounds = array<i64: 1, 128, 128>}]} {
    %c0_i32 = arith.constant 0 : i32
    %0 = arith.cmpi eq, %arg2, %c0_i32 : i32
    %1 = arith.extui %0 : i1 to i32
    %c0_i32_0 = arith.constant 0 : i32
    %2 = arith.cmpi ne, %1, %c0_i32_0 : i32
    scf.if %2 {
      %cst_12 = arith.constant 0.000000e+00 : f32
      %14 = vector.broadcast %cst_12 : f32 to vector<128x128xf32>
      %c0_13 = arith.constant 0 : index
      %c0_14 = arith.constant 0 : index
      %15 = vector.load %arg6[%c0_13, %c0_14] : memref<128x128xf32, #tpu.memory_space<vmem>>, vector<128x128xf32>
      tpu.vector_store %arg6[%c0_13, %c0_14], %14 {strides = array<i32>} : memref<128x128xf32, #tpu.memory_space<vmem>>, vector<128x128xf32>,
    } else {
    }
    %c0 = arith.constant 0 : index
    %c0_1 = arith.constant 0 : index
    %3 = vector.load %arg6[%c0, %c0_1] : memref<128x128xf32, #tpu.memory_space<vmem>>, vector<128x128xf32>
    %c0_2 = arith.constant 0 : index
    %c0_3 = arith.constant 0 : index
    %c0_4 = arith.constant 0 : index
    %4 = vector.load %arg3[%c0_2, %c0_3, %c0_4] : memref<1x128x128xbf16, #tpu.memory_space<vmem>>, vector<1x128x128xbf16>
    %5 = vector.shape_cast %4 : vector<1x128x128xbf16> to vector<128x128xbf16>
    %c0_5 = arith.constant 0 : index
    %c0_6 = arith.constant 0 : index
    %c0_7 = arith.constant 0 : index
    %6 = vector.load %arg4[%c0_5, %c0_6, %c0_7] : memref<1x128x128xbf16, #tpu.memory_space<vmem>>, vector<1x128x128xbf16>
    %7 = vector.shape_cast %6 : vector<1x128x128xbf16> to vector<128x128xbf16>
    %cst = arith.constant dense<0.000000e+00> : vector<128x128xf32>
    %8 = tpu.matmul %5, %7, %cst {dimension_numbers = #tpu.dot_dimension_numbers<[1], [1], [0], [0], [0, 0, 1, 0], [], []>} : vector<128x128xbf16>, vector<128x128xbf16>, vector<128x128xf32> -> vector<128x128xf32>
    %9 = arith.addf %3, %8 : vector<128x128xf32>
    %c0_8 = arith.constant 0 : index
    %c0_9 = arith.constant 0 : index
    %10 = vector.load %arg6[%c0_8, %c0_9] : memref<128x128xf32, #tpu.memory_space<vmem>>, vector<128x128xf32>
    tpu.vector_store %arg6[%c0_8, %c0_9], %9 {strides = array<i32>} : memref<128x128xf32, #tpu.memory_space<vmem>>, vector<128x128xf32>,
    %c0_i32_10 = arith.constant 0 : i32
    %11 = arith.cmpi eq, %arg2, %c0_i32_10 : i32
    %12 = arith.extui %11 : i1 to i32
    %c0_i32_11 = arith.constant 0 : i32
    %13 = arith.cmpi ne, %12, %c0_i32_11 : i32
    scf.if %13 {
      %c0_12 = arith.constant 0 : index
      %c0_13 = arith.constant 0 : index
      %14 = vector.load %arg6[%c0_12, %c0_13] : memref<128x128xf32, #tpu.memory_space<vmem>>, vector<128x128xf32>
      %c0_14 = arith.constant 0 : index
      %c0_15 = arith.constant 0 : index
      %c0_16 = arith.constant 0 : index
      %15 = vector.load %arg5[%c0_14, %c0_15, %c0_16] : memref<1x128x128xf32, #tpu.memory_space<vmem>>, vector<1x128x128xf32>
      %16 = vector.shape_cast %15 : vector<1x128x128xf32> to vector<128x128xf32>
      %17 = vector.shape_cast %14 : vector<128x128xf32> to vector<1x128x128xf32>
      tpu.vector_store %arg5[%c0_14, %c0_15, %c0_16], %17 {strides = array<i32>} : memref<1x128x128xf32, #tpu.memory_space<vmem>>, vector<1x128x128xf32>,
    } else {
    }
    return
  }
  func.func @transform_0(%arg0: i32, %arg1: i32, %arg2: i32) -> (i32, i32, i32) {
    %c0_i32 = arith.constant 0 : i32
    return %arg0, %arg1, %arg2 : i32, i32, i32
  }
  func.func @transform_1(%arg0: i32, %arg1: i32, %arg2: i32) -> (i32, i32, i32) {
    %c0_i32 = arith.constant 0 : i32
    %c0_i32_0 = arith.constant 0 : i32
    return %arg0, %c0_i32, %arg2 : i32, i32, i32
  }
  func.func @transform_2(%arg0: i32, %arg1: i32, %arg2: i32) -> (i32, i32, i32) {
    %c0_i32 = arith.constant 0 : i32
    %c0_i32_0 = arith.constant 0 : i32
    return %arg0, %arg1, %c0_i32 : i32, i32, i32
  }
}

</mosaic_0001>

<bundles_post_ra>
// kernel: conv2d_weight_modulate.2
= control target key start
LH: loop header
LB: loop body
LE: loop exit
PB: predicated region body
PF: predicated region fallthrough
CT: control target
= control target key end

     0   :  { %s558_s9 = smov 0   ;;  %s717_s0 = inlined_call_operand.vmem [shape: f32[2,1,128], index: 0, kind: input, shape index: {}]   ;;  %s718_s1 = inlined_call_operand.vmem [shape: f32[128,128], index: 1, kind: input, shape index: {}]   ;;  %s719_s2 = inlined_call_operand.vmem [shape: bf16[2,128,128], index: 2, kind: output, shape index: {}]  }
   0x1 LB: > { %s405_s10 = sadd.s32 4294967295, %s541_s9   ;;  %p409_p0 = scmp.ge.s32.totalorder %s541_s9, 1  ;;  %s541_s9 = sphi %s558_s9, %s12_s9  }
   0x2   : > { %p110_p1 = scmp.lt.s32.totalorder %s541_s9, 3 }
   0x4   : > { %p111_p2 = pnand %p409_p0, %p110_p1 }
   0x5   : > { %p130_p3 = scmp.lt.s32.totalorder (!%p111_p2), %s405_s10, 1  ;;  %v140_v0 = vld [vmem:[%s718_s1 + $0x10] sm:$0xff] (!%p111_p2)  ;;  %v138_v1 = vld [vmem:[%s718_s1] sm:$0xff] (!%p111_p2)  ;;  %v141_v2 = vld [vmem:[%s718_s1 + $0x18] sm:$0xff] (!%p111_p2) }
   0x6   : > { %114 = sbr.rel (%p111_p2) target bundleno = 209 (0xd1), region = 28  ;;  %v139_v3 = vld [vmem:[%s718_s1 + $0x8] sm:$0xff] (!%p111_p2)  ;;  %v142_v10 = vld [vmem:[%s718_s1 + $0x20] sm:$0xff] (!%p111_p2)  ;;  %v145_v17 = vld [vmem:[%s718_s1 + $0x38] sm:$0xff] (!%p111_p2) }
   0x7   : > { %v143_v9 = vld [vmem:[%s718_s1 + $0x28] sm:$0xff] (!%p111_p2)  ;;  %v144_v18 = vld [vmem:[%s718_s1 + $0x30] sm:$0xff] (!%p111_p2)  ;;  %v146_v24 = vld [vmem:[%s718_s1 + $0x40] sm:$0xff] (!%p111_p2) }
   0x8   : > { %v147_v23 = vld [vmem:[%s718_s1 + $0x48] sm:$0xff] (!%p111_p2)  ;;  %v149_v29 = vld [vmem:[%s718_s1 + $0x58] sm:$0xff] (!%p111_p2)  ;;  %v148_v30 = vld [vmem:[%s718_s1 + $0x50] sm:$0xff] (!%p111_p2) }
   0x9   : > { %v151_v35 = vld [vmem:[%s718_s1 + $0x68] sm:$0xff] (!%p111_p2)  ;;  %v150_v36 = vld [vmem:[%s718_s1 + $0x60] sm:$0xff] (!%p111_p2)  ;;  %v153_v41 = vld [vmem:[%s718_s1 + $0x78] sm:$0xff] (!%p111_p2) }
   0xa   : > { %v152_v42 = vld [vmem:[%s718_s1 + $0x70] sm:$0xff] (!%p111_p2) }
   0xd   : > { %s721_s10 = smov (!%p130_p3, %s405_s10), 1 }
   0xe   : > { %s132_s21 = scalar_lea.vmem %s717_s0, %s721_s10  ;;  %s431_s20 = sshll.u32 %s721_s10, 6 }
   0xf   : > { %v412_v4 = vld [vmem:[%s132_s21] ss:$0 sm:$0xff]  ;;  %s691_s23 = scalar_lea.vmem %s719_s2, %s431_s20 }
  0x10   : > { %v584_v5 = vmul.f32 %v412_v4, %v140_v0  ;;  %v586_v6 = vmul.f32 %v412_v4, %v138_v1  ;;  %v588_v7 = vmul.f32 %v412_v4, %v141_v2  ;;  %v590_v8 = vmul.f32 %v412_v4, %v139_v3 }
  0x11   : > { %v602_v13 = vmul.f32 %v412_v4, %v143_v9  ;;  %v608_v16 = vmul.f32 %v412_v4, %v142_v10  ;;  %v616_v19 = vmul.f32 %v412_v4, %v145_v17  ;;  %v622_v22 = vmul.f32 %v412_v4, %v144_v18 }
  0x12   : > { %v179_v11 = vmul.f32 %v584_v5, %v584_v5  ;;  %v177_v12 = vmul.f32 %v586_v6, %v586_v6  ;;  %v180_v14 = vmul.f32 %v588_v7, %v588_v7  ;;  %v178_v15 = vmul.f32 %v590_v8, %v590_v8 }
  0x13   : > { %v182_v20 = vmul.f32 %v602_v13, %v602_v13  ;;  %v181_v21 = vmul.f32 %v608_v16, %v608_v16  ;;  %v184_v25 = vmul.f32 %v616_v19, %v616_v19  ;;  %v183_v26 = vmul.f32 %v622_v22, %v622_v22 }
  0x14   : > { %197 = vadd.xlane.f32.xlu1 %v179_v11  ;;  %193 = vadd.xlane.f32.xlu0 %v177_v12  ;;  %v634_v27 = vmul.f32 %v412_v4, %v147_v23  ;;  %v636_v28 = vmul.f32 %v412_v4, %v146_v24  ;;  %v644_v31 = vmul.f32 %v412_v4, %v149_v29 }
  0x15   : > { %v650_v34 = vmul.f32 %v412_v4, %v148_v30  ;;  %v658_v37 = vmul.f32 %v412_v4, %v151_v35  ;;  %v664_v40 = vmul.f32 %v412_v4, %v150_v36  ;;  %v672_v43 = vmul.f32 %v412_v4, %v153_v41 }
  0x16   : > { %v186_v32 = vmul.f32 %v634_v27, %v634_v27  ;;  %v185_v33 = vmul.f32 %v636_v28, %v636_v28  ;;  %v188_v38 = vmul.f32 %v644_v31, %v644_v31  ;;  %v678_v46 = vmul.f32 %v412_v4, %v152_v42 }
  0x17   : > { %v187_v39 = vmul.f32 %v650_v34, %v650_v34  ;;  %v190_v44 = vmul.f32 %v658_v37, %v658_v37  ;;  %v189_v45 = vmul.f32 %v664_v40, %v664_v40  ;;  %v192_v47 = vmul.f32 %v672_v43, %v672_v43 }
  0x18   : > { %199 = vadd.xlane.f32.xlu1 %v180_v14  ;;  %195 = vadd.xlane.f32.xlu0 %v178_v15  ;;  %v191_v48 = vmul.f32 %v678_v46, %v678_v46 }
  0x1c   : > { %203 = vadd.xlane.f32.xlu1 %v182_v20  ;;  %201 = vadd.xlane.f32.xlu0 %v181_v21 }
  0x20   : > { %207 = vadd.xlane.f32.xlu1 %v184_v25  ;;  %205 = vadd.xlane.f32.xlu0 %v183_v26 }
  0x24   : > { %211 = vadd.xlane.f32.xlu1 %v186_v32  ;;  %209 = vadd.xlane.f32.xlu0 %v185_v33 }
  0x28   : > { %215 = vadd.xlane.f32.xlu1 %v188_v38  ;;  %213 = vadd.xlane.f32.xlu0 %v187_v39 }
  0x2c   : > { %219 = vadd.xlane.f32.xlu1 %v190_v44  ;;  %217 = vadd.xlane.f32.xlu0 %v189_v45 }
  0x30   : > { %223 = vadd.xlane.f32.xlu1 %v192_v47  ;;  %221 = vadd.xlane.f32.xlu0 %v191_v48 }
  0xa1   : > { %v198_v49 = vpop.xlane.xlu1 %197  ;;  %v194_v50 = vpop.xlane.xlu0 %193 }
  0xa2   : > { %v227_v51 = vadd.f32 1e-08, %v198_v49  ;;  %v225_v52 = vadd.f32 1e-08, %v194_v50 }
  0xa4   : > { %503 = vrsqrt.f32 %v227_v51 }
  0xa5   : > { %v200_v53 = vpop.xlane.xlu1 %199  ;;  %v196_v54 = vpop.xlane.xlu0 %195  ;;  %505 = vrsqrt.f32 %v225_v52 }
  0xa6   : > { %v228_v55 = vadd.f32 1e-08, %v200_v53  ;;  %v226_v56 = vadd.f32 1e-08, %v196_v54 }
  0xa8   : > { %507 = vrsqrt.f32 %v228_v55 }
  0xa9   : > { %509 = vrsqrt.f32 %v226_v56  ;;  %v204_v57 = vpop.xlane.xlu1 %203  ;;  %v202_v58 = vpop.xlane.xlu0 %201 }
  0xaa   : > { %v230_v59 = vadd.f32 1e-08, %v204_v57  ;;  %v229_v60 = vadd.f32 1e-08, %v202_v58 }
  0xac   : > { %511 = vrsqrt.f32 %v230_v59 }
  0xad   : > { %513 = vrsqrt.f32 %v229_v60  ;;  %v208_v61 = vpop.xlane.xlu1 %207  ;;  %v206_v62 = vpop.xlane.xlu0 %205 }
  0xae   : > { %v232_v63 = vadd.f32 1e-08, %v208_v61  ;;  %v231_v0 = vadd.f32 1e-08, %v206_v62  ;;  %v504_v1 = vpop.eup %503 }
  0xaf   : > { %v506_v2 = vpop.eup %505  ;;  %v259_v14 = vmul.f32 %v504_v1, %v584_v5 }
  0xb0   : > { %515 = vrsqrt.f32 %v232_v63  ;;  %v257_v17 = vmul.f32 %v506_v2, %v586_v6 }
  0xb1   : > { %517 = vrsqrt.f32 %v231_v0  ;;  %v212_v3 = vpop.xlane.xlu1 %211  ;;  %v210_v4 = vpop.xlane.xlu0 %209 }
  0xb2   : > { %v508_v9 = vpop.eup %507  ;;  %v234_v10 = vadd.f32 1e-08, %v212_v3  ;;  %v233_v11 = vadd.f32 1e-08, %v210_v4 }
  0xb3   : > { %v510_v12 = vpop.eup %509  ;;  %v260_v15 = vmul.f32 %v508_v9, %v588_v7 }
  0xb4   : > { %v258_v18 = vmul.f32 %v510_v12, %v590_v8  ;;  %519 = vrsqrt.f32 %v234_v10 }
  0xb5   : > { %v456_v20 = vpack.c.bf16 %v260_v15, %v259_v14  ;;  %521 = vrsqrt.f32 %v233_v11  ;;  %v216_v21 = vpop.xlane.xlu1 %215  ;;  %v214_v23 = vpop.xlane.xlu0 %213 }
  0xb6   : > { %v512_v24 = vpop.eup %511  ;;  %v451_v5 = vpack.c.bf16 %v258_v18, %v257_v17  ;;  %v236_v25 = vadd.f32 1e-08, %v216_v21  ;;  %v235_v7 = vadd.f32 1e-08, %v214_v23 }
  0xb7   : > { %v514_v6 = vpop.eup %513  ;;  %488 = vst [vmem:[%s691_s23 + $0x8] sm:$0xff] %v456_v20   ;;  %v262_v26 = vmul.f32 %v512_v24, %v602_v13 }
  0xb8   : > { %452 = vst [vmem:[%s691_s23] sm:$0xff] %v451_v5   ;;  %v261_v29 = vmul.f32 %v514_v6, %v608_v16  ;;  %523 = vrsqrt.f32 %v236_v25 }
  0xb9   : > { %525 = vrsqrt.f32 %v235_v7  ;;  %v220_v8 = vpop.xlane.xlu1 %219  ;;  %v218_v30 = vpop.xlane.xlu0 %217 }
  0xba   : > { %v516_v32 = vpop.eup %515  ;;  %v461_v33 = vpack.c.bf16 %v262_v26, %v261_v29  ;;  %v238_v35 = vadd.f32 1e-08, %v220_v8  ;;  %v237_v36 = vadd.f32 1e-08, %v218_v30 }
  0xbb   : > { %v518_v38 = vpop.eup %517  ;;  %v264_v39 = vmul.f32 %v516_v32, %v616_v19 }
  0xbc   : > { %489 = vst [vmem:[%s691_s23 + $0x10] sm:$0xff] %v461_v33   ;;  %v263_v41 = vmul.f32 %v518_v38, %v622_v22  ;;  %527 = vrsqrt.f32 %v238_v35 }
  0xbd   : > { %529 = vrsqrt.f32 %v237_v36  ;;  %v224_v13 = vpop.xlane.xlu1 %223  ;;  %v222_v16 = vpop.xlane.xlu0 %221 }
  0xbe   : > { %v520_v42 = vpop.eup %519  ;;  %v466_v44 = vpack.c.bf16 %v264_v39, %v263_v41  ;;  %v240_v45 = vadd.f32 1e-08, %v224_v13  ;;  %v239_v47 = vadd.f32 1e-08, %v222_v16 }
  0xbf   : > { %v522_v48 = vpop.eup %521  ;;  %v266_v49 = vmul.f32 %v520_v42, %v634_v27 }
  0xc0   : > { %490 = vst [vmem:[%s691_s23 + $0x18] sm:$0xff] %v466_v44   ;;  %v265_v50 = vmul.f32 %v522_v48, %v636_v28  ;;  %531 = vrsqrt.f32 %v240_v45 }
  0xc1   : > { %533 = vrsqrt.f32 %v239_v47 }
  0xc2   : > { %v524_v19 = vpop.eup %523  ;;  %v471_v22 = vpack.c.bf16 %v266_v49, %v265_v50 }
  0xc3   : > { %v526_v51 = vpop.eup %525  ;;  %v268_v52 = vmul.f32 %v524_v19, %v644_v31 }
  0xc4   : > { %491 = vst [vmem:[%s691_s23 + $0x20] sm:$0xff] %v471_v22   ;;  %v267_v53 = vmul.f32 %v526_v51, %v650_v34 }
  0xc6   : > { %v528_v54 = vpop.eup %527  ;;  %v476_v55 = vpack.c.bf16 %v268_v52, %v267_v53 }
  0xc7   : > { %v530_v56 = vpop.eup %529  ;;  %v270_v27 = vmul.f32 %v528_v54, %v658_v37 }
  0xc8   : > { %492 = vst [vmem:[%s691_s23 + $0x28] sm:$0xff] %v476_v55   ;;  %v269_v28 = vmul.f32 %v530_v56, %v664_v40 }
  0xca   : > { %v532_v57 = vpop.eup %531  ;;  %v481_v58 = vpack.c.bf16 %v270_v27, %v269_v28 }
  0xcb   : > { %v534_v59 = vpop.eup %533  ;;  %v272_v60 = vmul.f32 %v532_v57, %v672_v43 }
  0xcc   : > { %493 = vst [vmem:[%s691_s23 + $0x30] sm:$0xff] %v481_v58   ;;  %v271_v31 = vmul.f32 %v534_v59, %v678_v46 }
  0xce   : > { %v486_v61 = vpack.c.bf16 %v272_v60, %v271_v31 }
  0xd0   : > { %494 = vst [vmem:[%s691_s23 + $0x38] sm:$0xff] %v486_v61  }
  0xd1 PF: > { %s12_s9 = sadd.s32 1, %s541_s9  }
  0xd2   : > { %p9_p4 = scmp.ge.s32.totalorder %s12_s9, 4  }
  0xd4   :  { %11 = sbr.rel (!%p9_p4) target bundleno = 1 (0x1), region = 58 }

// kernel: conv2d_weight_modulate.3
= control target key start
LH: loop header
LB: loop body
LE: loop exit
PB: predicated region body
PF: predicated region fallthrough
CT: control target
= control target key end

     0   :  { %s882_s9 = smov 0   ;;  %s884_s10 = smov 0   ;;  %s978_s0 = inlined_call_operand.vmem [shape: bf16[2,256,128], index: 0, kind: input, shape index: {}]   ;;  %s979_s1 = inlined_call_operand.vmem [shape: bf16[2,128,128], index: 1, kind: input, shape index: {}]   ;;  %s980_s2 = inlined_call_operand.vmem [shape: f32[2,256,128], index: 2, kind: output, shape index: {}]  }
   0x1   :  { %s886_s11 = smov 0   ;;  %s888_s12 = smov 0  }
   0x2   :  { %s890_s13 = smov 0  }
   0x3 LB: > { %s27_s14 = sadd.s32 1, %s857_s11  ;;  %s31_s15 = sadd.s32 1, %s861_s12  ;;  %s865_s13 = sphi %s890_s13, %s12_s13   ;;  %s861_s12 = sphi %s888_s12, %s984_s12   ;;  %s857_s11 = sphi %s886_s11, %s983_s11   ;;  %s853_s10 = sphi %s884_s10, %s982_s10   ;;  %s849_s9 = sphi %s882_s9, %s981_s9  }
   0x4   : > { %p29_p0 = scmp.ge.s32.totalorder %s27_s14, 2  ;;  %p679_p1 = scmp.ge.s32.totalorder %s865_s13, 1 }
   0x5   : > { %p160_p2 = scmp.lt.s32.totalorder %s865_s13, 5 }
   0x6   : > { %s986_s14 = smov (%p29_p0, %s27_s14), 0  ;;  %s988_s15 = smov (!%p29_p0, %s31_s15), %s861_s12 }
   0x7   : > { %p161_p3 = pnand %p679_p1, %p160_p2  ;;  %p33_p4 = scmp.ge.s32.totalorder %s988_s15, 2 }
   0x8   : > { %p202_p5 = scmp.lt.s32.totalorder (!%p161_p3), %s853_s10, 1  ;;  %s680_s16 = sshll.u32 (!%p161_p3), %s849_s9, 4 }
   0x9   : > { %s990_s15 = smov (%p33_p4, %s988_s15), 0  ;;  %164 = sbr.rel (%p161_p3) target bundleno = 308 (0x134), region = 28 }
   0xa   : > { %p204_p6 = scmp.lt.s32.totalorder (!%p161_p3), %s680_s16, 31 }
  0x10   : > { %s992_s10 = smov (!%p202_p5, %s853_s10), 1  ;;  %s994_s16 = smov (!%p204_p6, %s680_s16), 31 }
  0x11   : > { %s706_s17 = sshll.u32 %s992_s10, 6  ;;  %s681_s18 = sshll.u32 %s992_s10, 5 }
  0x12   : > { %s915_s21 = scalar_lea.vmem %s979_s1, %s706_s17  ;;  %s917_s22 = sadd.s32 %s681_s18, %s994_s16 }
  0x13   : > { %v811_v0 = vld [vmem:[%s915_s21] sm:$0xff]   ;;  %v812_v1 = vld [vmem:[%s915_s21 + $0x8] sm:$0xff]   ;;  %s682_s23 = sshll.u32 %s917_s22, 2  ;;  %v813_v2 = vld [vmem:[%s915_s21 + $0x10] sm:$0xff]   ;;  %s687_s27 = sshll.u32 %s917_s22, 3 }
  0x14   : > { %723 = vmatprep.subr.bf16.mxu0 %v811_v0  ;;  %755 = vmatprep.subr.bf16.mxu1 %v811_v0  ;;  %s925_s26 = scalar_lea.vmem %s978_s0, %s682_s23  ;;  %v814_v5 = vld [vmem:[%s915_s21 + $0x18] sm:$0xff]   ;;  %v815_v6 = vld [vmem:[%s915_s21 + $0x20] sm:$0xff]   ;;  %v816_v7 = vld [vmem:[%s915_s21 + $0x28] sm:$0xff]   ;;  %s945_s30 = scalar_lea.vmem %s980_s2, %s687_s27 }
  0x15   : > { %724 = vmatpush3.bf16.xpose.msra.mxu0 %v811_v0  ;;  %763 = vmatpush3.bf16.xpose.msra.mxu1 %v811_v0  ;;  %v819_v3 = vld [vmem:[%s925_s26] sm:$0xff]   ;;  %v817_v8 = vld [vmem:[%s915_s21 + $0x30] sm:$0xff]   ;;  %v818_v9 = vld [vmem:[%s915_s21 + $0x38] sm:$0xff]  }
  0x16   : > { %725 = vmatprep.subr.bf16.mxu0 %v812_v1  ;;  %756 = vmatprep.subr.bf16.mxu1 %v812_v1  ;;  %v820_v4 = vld [vmem:[%s925_s26 + $0x20] sm:$0xff]   ;;  %v821_v10 = vld [vmem:[%s925_s26 + $0x8] sm:$0xff]   ;;  %v823_v12 = vld [vmem:[%s925_s26 + $0x10] sm:$0xff]  }
  0x17   : > { %739 = vmatprep.mubr.bf16.mxu0 %v819_v3  ;;  %747 = vmatprep.mubr.bf16.mxu1 %v820_v4  ;;  %v822_v11 = vld [vmem:[%s925_s26 + $0x28] sm:$0xff]   ;;  %v824_v13 = vld [vmem:[%s925_s26 + $0x30] sm:$0xff]   ;;  %v825_v14 = vld [vmem:[%s925_s26 + $0x18] sm:$0xff]  }
  0x18   : > { %v826_v15 = vld [vmem:[%s925_s26 + $0x38] sm:$0xff]  }
  0x1d   : > { %726 = vmatpush3.bf16.xpose.msra.mxu0 %v812_v1  ;;  %764 = vmatpush3.bf16.xpose.msra.mxu1 %v812_v1 }
  0x1e   : > { %727 = vmatprep.subr.bf16.mxu0 %v813_v2  ;;  %757 = vmatprep.subr.bf16.mxu1 %v813_v2 }
  0x25   : > { %728 = vmatpush3.bf16.xpose.msra.mxu0 %v813_v2  ;;  %765 = vmatpush3.bf16.xpose.msra.mxu1 %v813_v2 }
  0x26   : > { %729 = vmatprep.subr.bf16.mxu0 %v814_v5  ;;  %758 = vmatprep.subr.bf16.mxu1 %v814_v5 }
  0x2d   : > { %730 = vmatpush3.bf16.xpose.msra.mxu0 %v814_v5  ;;  %766 = vmatpush3.bf16.xpose.msra.mxu1 %v814_v5 }
  0x2e   : > { %731 = vmatprep.subr.bf16.mxu0 %v815_v6  ;;  %759 = vmatprep.subr.bf16.mxu1 %v815_v6 }
  0x35   : > { %732 = vmatpush3.bf16.xpose.msra.mxu0 %v815_v6  ;;  %767 = vmatpush3.bf16.xpose.msra.mxu1 %v815_v6 }
  0x36   : > { %733 = vmatprep.subr.bf16.mxu0 %v816_v7  ;;  %760 = vmatprep.subr.bf16.mxu1 %v816_v7 }
  0x3d   : > { %734 = vmatpush3.bf16.xpose.msra.mxu0 %v816_v7  ;;  %768 = vmatpush3.bf16.xpose.msra.mxu1 %v816_v7 }
  0x3e   : > { %735 = vmatprep.subr.bf16.mxu0 %v817_v8  ;;  %761 = vmatprep.subr.bf16.mxu1 %v817_v8 }
  0x45   : > { %736 = vmatpush3.bf16.xpose.msra.mxu0 %v817_v8  ;;  %769 = vmatpush3.bf16.xpose.msra.mxu1 %v817_v8 }
  0x46   : > { %737 = vmatprep.subr.bf16.mxu0 %v818_v9  ;;  %762 = vmatprep.subr.bf16.mxu1 %v818_v9 }
  0x4d   : > { %738 = vmatpush3.bf16.xpose.msra.mxu0 %v818_v9  ;;  %770 = vmatpush3.bf16.xpose.msra.mxu1 %v818_v9 }
  0x54   : > { %740 = vmatmul.mubr.bf16.vlgmr.msra.gmra.mrb[0].mxu0 %v821_v10  ;;  %748 = vmatmul.mubr.bf16.vlgmr.msra.gmra.mrb[0].mxu1 %v822_v11 }
  0x55   : > { %743 = vmatprep.mubr.bf16.mxu0 %v823_v12  ;;  %751 = vmatprep.mubr.bf16.mxu1 %v824_v13 }
  0x5c   : > { %744 = vmatmul.mubr.bf16.gmra.mrb[4].mxu0 %v825_v14  ;;  %752 = vmatmul.mubr.bf16.gmra.mrb[4].mxu1 %v826_v15 }
 0x127   : > { %v741_v16 = vpop.f32.mrb[0].mxu0  ;;  %v749_v17 = vpop.f32.mrb[0].mxu1 }
 0x128   : > { %547 = vst [vmem:[%s945_s30 + $0x10] sm:$0xff] %v741_v16  ;;  %555 = vst [vmem:[%s945_s30 + $0x50] sm:$0xff] %v749_v17  ;;  %v431_v18 = vpop.f32.mrb[1].mxu0  ;;  %v463_v19 = vpop.f32.mrb[1].mxu1 }
 0x129   : > { %545 = vst [vmem:[%s945_s30] sm:$0xff] %v431_v18  ;;  %553 = vst [vmem:[%s945_s30 + $0x40] sm:$0xff] %v463_v19  ;;  %v742_v20 = vpop.f32.mrb[2].mxu0  ;;  %v750_v21 = vpop.f32.mrb[2].mxu1 }
 0x12a   : > { %548 = vst [vmem:[%s945_s30 + $0x18] sm:$0xff] %v742_v20  ;;  %556 = vst [vmem:[%s945_s30 + $0x58] sm:$0xff] %v750_v21  ;;  %v434_v22 = vpop.f32.mrb[3].mxu0  ;;  %v466_v23 = vpop.f32.mrb[3].mxu1 }
 0x12b   : > { %546 = vst [vmem:[%s945_s30 + $0x8] sm:$0xff] %v434_v22  ;;  %554 = vst [vmem:[%s945_s30 + $0x48] sm:$0xff] %v466_v23 }
 0x12f   : > { %v745_v24 = vpop.f32.mrb[4].mxu0  ;;  %v753_v25 = vpop.f32.mrb[4].mxu1 }
 0x130   : > { %551 = vst [vmem:[%s945_s30 + $0x30] sm:$0xff] %v745_v24  ;;  %559 = vst [vmem:[%s945_s30 + $0x70] sm:$0xff] %v753_v25  ;;  %v447_v26 = vpop.f32.mrb[5].mxu0  ;;  %v479_v27 = vpop.f32.mrb[5].mxu1 }
 0x131   : > { %549 = vst [vmem:[%s945_s30 + $0x20] sm:$0xff] %v447_v26  ;;  %557 = vst [vmem:[%s945_s30 + $0x60] sm:$0xff] %v479_v27  ;;  %v746_v28 = vpop.f32.mrb[6].mxu0  ;;  %v754_v29 = vpop.f32.mrb[6].mxu1 }
 0x132   : > { %552 = vst [vmem:[%s945_s30 + $0x38] sm:$0xff] %v746_v28  ;;  %560 = vst [vmem:[%s945_s30 + $0x78] sm:$0xff] %v754_v29  ;;  %v450_v30 = vpop.f32.mrb[7].mxu0  ;;  %v482_v31 = vpop.f32.mrb[7].mxu1 }
 0x133   : > { %550 = vst [vmem:[%s945_s30 + $0x28] sm:$0xff] %v450_v30  ;;  %558 = vst [vmem:[%s945_s30 + $0x68] sm:$0xff] %v482_v31 }
 0x134 PF: > { %s12_s13 = sadd.s32 1, %s865_s13   ;;  %s981_s9 = smov %s857_s11 }
 0x135   : > { %p9_p7 = scmp.ge.s32.totalorder %s12_s13, 6   ;;  %s982_s10 = smov %s861_s12 }
 0x136   : > { %s983_s11 = smov %s986_s14  ;;  %s984_s12 = smov %s990_s15 }
 0x137   :  { %11 = sbr.rel (!%p9_p7) target bundleno = 3 (0x3), region = 69 }

</bundles_post_ra>
